<compile_context>
chip_gen: v7x
topology: tpu7x:2x2x1
jax: 0.10.0
libtpu: 0.0.40
codegen_flags: <defaults>
</compile_context>

<pallas_src>
import jax
import jax.numpy as jnp
from jax import lax
from jax.experimental import pallas as pl
from jax.experimental.pallas import tpu as pltpu

EPS = 1e-6


def _norm2d_kernel(x_ref, g_ref, b_ref, o_ref):
    # x_ref/o_ref: (C, tile_hw) slab of the (B, C, H*W) tensor (batch squeezed).
    # g_ref/b_ref: (C, 1) affine params, broadcast along the lane (spatial) axis.
    x = x_ref[...].astype(jnp.float32)
    c = x.shape[0]
    inv_c = 1.0 / c
    mean = jnp.sum(x, axis=0, keepdims=True) * inv_c          # (1, tile_hw)
    mean_sq = jnp.sum(x * x, axis=0, keepdims=True) * inv_c   # (1, tile_hw)
    var = mean_sq - mean * mean
    inv = lax.rsqrt(var + EPS)
    g = g_ref[...].astype(jnp.float32)                        # (C, 1)
    b = b_ref[...].astype(jnp.float32)                        # (C, 1)
    y = (x - mean) * inv * g + b
    o_ref[...] = y.astype(o_ref.dtype)


def _choose_tile_hw(hw, c, itemsize, target_bytes=4 << 20):
    """Pick a lane-dense spatial tile giving roughly target_bytes per block."""
    if c * hw * itemsize <= target_bytes:
        return hw                              # whole spatial extent in one block
    tile = (target_bytes // (c * itemsize)) // 128 * 128
    return max(128, int(tile))


@jax.jit
def norm2d(x_nchw, gamma, beta):
    """LayerNorm over the channel axis of an NCHW tensor (Norm2d.forward)."""
    B, C, H, W = x_nchw.shape
    HW = H * W

    x3d = x_nchw.reshape(B, C, HW)             # contiguous collapse, no HBM pass
    g2d = gamma.reshape(C, 1)
    b2d = beta.reshape(C, 1)

    tile_hw = _choose_tile_hw(HW, C, x_nchw.dtype.itemsize)
    grid = (B, pl.cdiv(HW, tile_hw))

    block_bytes = C * tile_hw * x_nchw.dtype.itemsize
    # in + out, double-buffered (+params/headroom); >= v5e's 16 MiB default
    # scoped limit, comfortably below v7x's 64 MiB physical VMEM.
    vmem_limit = int(min(56 << 20, max(32 << 20, 5 * block_bytes)))

    out3d = pl.pallas_call(
        _norm2d_kernel,
        out_shape=jax.ShapeDtypeStruct((B, C, HW), x_nchw.dtype),
        grid_spec=pltpu.PrefetchScalarGridSpec(
            num_scalar_prefetch=0,
            grid=grid,
            in_specs=[
                pl.BlockSpec((pl.Squeezed(), C, tile_hw),
                             lambda b, j: (b, 0, j)),
                pl.BlockSpec((C, 1), lambda b, j: (0, 0)),
                pl.BlockSpec((C, 1), lambda b, j: (0, 0)),
            ],
            out_specs=pl.BlockSpec((pl.Squeezed(), C, tile_hw),
                                   lambda b, j: (b, 0, j)),
        ),
        compiler_params=pltpu.CompilerParams(
            dimension_semantics=("parallel", "parallel"),
            vmem_limit_bytes=vmem_limit),
    )(x3d, g2d, b2d)

    return out3d.reshape(B, C, H, W)


def _norm2d_ref(x_nchw, gamma, beta):
    x = jnp.transpose(x_nchw, (0, 2, 3, 1)).astype(jnp.float32)
    mean = jnp.mean(x, axis=-1, keepdims=True)
    var = jnp.mean((x - mean) ** 2, axis=-1, keepdims=True)
    y = (x - mean) * lax.rsqrt(var + EPS) * gamma + beta
    return jnp.transpose(y, (0, 3, 1, 2)).astype(x_nchw.dtype)


if __name__ == "__main__":
    key = jax.random.PRNGKey(0)
    kx, kg, kb = jax.random.split(key, 3)

    B, C, H, W = 2, 32, 16, 16  # embed_dim = 32
    x = jax.random.normal(kx, (B, C, H, W), dtype=jnp.float32)
    # Perturb the affine params so that path is actually exercised
    # (PyTorch defaults would be ones/zeros).
    gamma = 1.0 + 0.1 * jax.random.normal(kg, (C,), dtype=jnp.float32)
    beta = 0.1 * jax.random.normal(kb, (C,), dtype=jnp.float32)

    out = jax.block_until_ready(norm2d(x, gamma, beta))
    ref = _norm2d_ref(x, gamma, beta)

    assert out.shape == (B, C, H, W)
    assert jnp.allclose(out, ref, atol=1e-5, rtol=1e-5)

    print("KERNEL_OK")
</pallas_src>

<mosaic_0001>
module attributes {stable_mosaic.version = 11 : i64} {
  func.func @_norm2d_kernel(%arg0: i32, %arg1: i32, %arg2: memref<1x32x256xf32, #tpu.memory_space<vmem>>, %arg3: memref<32x1xf32, #tpu.memory_space<vmem>>, %arg4: memref<32x1xf32, #tpu.memory_space<vmem>>, %arg5: memref<1x32x256xf32, #tpu.memory_space<vmem>>) attributes {dimension_semantics = [#tpu.dimension_semantics<parallel>, #tpu.dimension_semantics<parallel>], iteration_bounds = array<i64: 2, 1>, scalar_prefetch = 0 : i64, scratch_operands = 0 : i64, tpu.core_type = #tpu.core_type<tc>, window_params = [{transform_indices = @transform_0, window_bounds = array<i64: 1, 32, 256>}, {pipeline_mode = #tpu.pipeline_mode<synchronous>, transform_indices = @transform_1, window_bounds = array<i64: 32, 1>}, {pipeline_mode = #tpu.pipeline_mode<synchronous>, transform_indices = @transform_2, window_bounds = array<i64: 32, 1>}, {transform_indices = @transform_3, window_bounds = array<i64: 1, 32, 256>}]} {
    %c0 = arith.constant 0 : index
    %c0_0 = arith.constant 0 : index
    %c0_1 = arith.constant 0 : index
    %0 = vector.load %arg2[%c0, %c0_0, %c0_1] : memref<1x32x256xf32, #tpu.memory_space<vmem>>, vector<1x32x256xf32>
    %1 = vector.shape_cast %0 : vector<1x32x256xf32> to vector<32x256xf32>
    %cst = arith.constant dense<0.000000e+00> : vector<256xf32>
    %2 = vector.multi_reduction <add>, %1, %cst [0] : vector<32x256xf32> to vector<256xf32>
    %3 = vector.shape_cast %2 : vector<256xf32> to vector<1x256xf32>
    %cst_2 = arith.constant 3.125000e-02 : f32
    %4 = vector.broadcast %cst_2 : f32 to vector<1x256xf32>
    %5 = arith.mulf %3, %4 : vector<1x256xf32>
    %6 = arith.mulf %1, %1 : vector<32x256xf32>
    %cst_3 = arith.constant dense<0.000000e+00> : vector<256xf32>
    %7 = vector.multi_reduction <add>, %6, %cst_3 [0] : vector<32x256xf32> to vector<256xf32>
    %8 = vector.shape_cast %7 : vector<256xf32> to vector<1x256xf32>
    %cst_4 = arith.constant 3.125000e-02 : f32
    %9 = vector.broadcast %cst_4 : f32 to vector<1x256xf32>
    %10 = arith.mulf %8, %9 : vector<1x256xf32>
    %11 = arith.mulf %5, %5 : vector<1x256xf32>
    %12 = arith.subf %10, %11 : vector<1x256xf32>
    %cst_5 = arith.constant 9.99999997E-7 : f32
    %13 = vector.broadcast %cst_5 : f32 to vector<1x256xf32>
    %14 = arith.addf %12, %13 : vector<1x256xf32>
    %15 = math.rsqrt %14 : vector<1x256xf32>
    %c0_6 = arith.constant 0 : index
    %c0_7 = arith.constant 0 : index
    %16 = vector.load %arg3[%c0_6, %c0_7] : memref<32x1xf32, #tpu.memory_space<vmem>>, vector<32x1xf32>
    %c0_8 = arith.constant 0 : index
    %c0_9 = arith.constant 0 : index
    %17 = vector.load %arg4[%c0_8, %c0_9] : memref<32x1xf32, #tpu.memory_space<vmem>>, vector<32x1xf32>
    %18 = vector.broadcast %5 : vector<1x256xf32> to vector<32x256xf32>
    %19 = arith.subf %1, %18 : vector<32x256xf32>
    %20 = vector.broadcast %15 : vector<1x256xf32> to vector<32x256xf32>
    %21 = arith.mulf %19, %20 : vector<32x256xf32>
    %22 = vector.broadcast %16 : vector<32x1xf32> to vector<32x256xf32>
    %23 = arith.mulf %21, %22 : vector<32x256xf32>
    %24 = vector.broadcast %17 : vector<32x1xf32> to vector<32x256xf32>
    %25 = arith.addf %23, %24 : vector<32x256xf32>
    %c0_10 = arith.constant 0 : index
    %c0_11 = arith.constant 0 : index
    %c0_12 = arith.constant 0 : index
    %26 = vector.load %arg5[%c0_10, %c0_11, %c0_12] : memref<1x32x256xf32, #tpu.memory_space<vmem>>, vector<1x32x256xf32>
    %27 = vector.shape_cast %26 : vector<1x32x256xf32> to vector<32x256xf32>
    %28 = vector.shape_cast %25 : vector<32x256xf32> to vector<1x32x256xf32>
    tpu.vector_store %arg5[%c0_10, %c0_11, %c0_12], %28 {strides = array<i32>} : memref<1x32x256xf32, #tpu.memory_space<vmem>>, vector<1x32x256xf32>,
    return
  }
  func.func @transform_0(%arg0: i32, %arg1: i32) -> (i32, i32, i32) {
    %c0_i32 = arith.constant 0 : i32
    %c0_i32_0 = arith.constant 0 : i32
    return %arg0, %c0_i32, %arg1 : i32, i32, i32
  }
  func.func @transform_1(%arg0: i32, %arg1: i32) -> (i32, i32) {
    %c0_i32 = arith.constant 0 : i32
    %c0_i32_0 = arith.constant 0 : i32
    %c0_i32_1 = arith.constant 0 : i32
    return %c0_i32, %c0_i32_0 : i32, i32
  }
  func.func @transform_2(%arg0: i32, %arg1: i32) -> (i32, i32) {
    %c0_i32 = arith.constant 0 : i32
    %c0_i32_0 = arith.constant 0 : i32
    %c0_i32_1 = arith.constant 0 : i32
    return %c0_i32, %c0_i32_0 : i32, i32
  }
  func.func @transform_3(%arg0: i32, %arg1: i32) -> (i32, i32, i32) {
    %c0_i32 = arith.constant 0 : i32
    %c0_i32_0 = arith.constant 0 : i32
    return %arg0, %c0_i32, %arg1 : i32, i32, i32
  }
}

</mosaic_0001>

<bundles_post_ra>
// kernel: norm2d.1
= control target key start
LH: loop header
LB: loop body
LE: loop exit
PB: predicated region body
PF: predicated region fallthrough
CT: control target
= control target key end

     0   :  { %s538_s12 = smov 0   ;;  %s540_s13 = smov 0   ;;  %s654_s0 = inlined_call_operand.vmem [shape: f32[2,32,256], index: 0, kind: input, shape index: {}]   ;;  %s655_s1 = inlined_call_operand.vmem [shape: f32[32,1], index: 1, kind: input, shape index: {}]   ;;  %s656_s2 = inlined_call_operand.vmem [shape: f32[32,1], index: 2, kind: input, shape index: {}]   ;;  %s657_s3 = inlined_call_operand.vmem [shape: f32[2,32,256], index: 3, kind: output, shape index: {}]  }
   0x1   :  { %s542_s14 = smov 0  }
   0x2 LB: > { %s25_s15 = sadd.s32 1, %s511_s13  ;;  %p453_p0 = scmp.ge.s32.totalorder %s515_s14, 1  ;;  %s515_s14 = sphi %s542_s14, %s13_s14   ;;  %s511_s13 = sphi %s540_s13, %s659_s13   ;;  %s507_s12 = sphi %s538_s12, %s658_s12  }
   0x3   : > { %p27_p1 = scmp.ge.s32.totalorder %s25_s15, 2  ;;  %p158_p2 = scmp.lt.s32.totalorder %s515_s14, 3 }
   0x5   : > { %s661_s15 = smov (%p27_p1, %s25_s15), 0  ;;  %p159_p3 = pnand %p453_p0, %p158_p2 }
   0x6   : > { %v276_v0 = vld [vmem:[%s655_s1 + $0x10] sm:$0xff] (!%p159_p3)  ;;  %v274_v1 = vld [vmem:[%s655_s1] sm:$0xff] (!%p159_p3)  ;;  %v517_v2 = vmov (!%p159_p3), 0   ;;  %v277_v3 = vld [vmem:[%s655_s1 + $0x18] sm:$0xff] (!%p159_p3)  ;;  %p191_p4 = scmp.lt.s32.totalorder (!%p159_p3), %s507_s12, 1 }
   0x7   : > { %162 = sbr.rel (%p159_p3) target bundleno = 152 (0x98), region = 32  ;;  %488 = vset.pattern.permute.xlu1 (!%p159_p3), %v517_v2  ;;  %487 = vset.pattern.permute.xlu0 (!%p159_p3), %v517_v2  ;;  %v275_v4 = vld [vmem:[%s655_s1 + $0x8] sm:$0xff] (!%p159_p3)  ;;  %v278_v6 = vld [vmem:[%s656_s2] sm:$0xff] (!%p159_p3)  ;;  %v281_v7 = vld [vmem:[%s656_s2 + $0x18] sm:$0xff] (!%p159_p3) }
   0x8   : > { %310 = vperm.xlu1 (!%p159_p3), %488, %v276_v0   ;;  %300 = vperm.xlu0 (!%p159_p3), %487, %v274_v1   ;;  %v279_v5 = vld [vmem:[%s656_s2 + $0x8] sm:$0xff] (!%p159_p3)  ;;  %v280_v8 = vld [vmem:[%s656_s2 + $0x10] sm:$0xff] (!%p159_p3) }
   0xc   : > { %315 = vperm.xlu1 (!%p159_p3), %488, %v277_v3   ;;  %305 = vperm.xlu0 (!%p159_p3), %487, %v275_v4  }
   0xe   : > { %s663_s12 = smov (!%p191_p4, %s507_s12), 1 }
   0xf   : > { %s460_s5 = sshll.u32 %s663_s12, 6 }
  0x10   : > { %333 = vperm.xlu1 %488, %v279_v5   ;;  %328 = vperm.xlu0 %487, %v278_v6   ;;  %s198_s8 = scalar_lea.vmem %s654_s0, %s460_s5  ;;  %s208_s11 = scalar_lea.vmem %s657_s3, %s460_s5 }
  0x11   : > { %v592_v9 = vld [vmem:[%s198_s8] sm:$0xff]  ;;  %v594_v10 = vld [vmem:[%s198_s8 + $0x10] sm:$0xff]  ;;  %v596_v11 = vld [vmem:[%s198_s8 + $0x8] sm:$0xff] }
  0x12   : > { %v598_v12 = vld [vmem:[%s198_s8 + $0x18] sm:$0xff]  ;;  %v218_v13 = vadd.f32 %v594_v10, %v592_v9  ;;  %v238_v14 = vmul.f32 %v592_v9, %v592_v9  ;;  %v240_v15 = vmul.f32 %v594_v10, %v594_v10  ;;  %v606_v16 = vld [vmem:[%s198_s8 + $0x20] sm:$0xff]  ;;  %v239_v18 = vmul.f32 %v596_v11, %v596_v11  ;;  %v614_v20 = vld [vmem:[%s198_s8 + $0x28] sm:$0xff] }
  0x13   : > { %v227_v17 = vadd.f32 %v598_v12, %v596_v11  ;;  %v241_v19 = vmul.f32 %v598_v12, %v598_v12  ;;  %v242_v22 = vmul.f32 %v606_v16, %v606_v16  ;;  %v619_v24 = vld [vmem:[%s198_s8 + $0x30] sm:$0xff]  ;;  %v243_v26 = vmul.f32 %v614_v20, %v614_v20  ;;  %v624_v28 = vld [vmem:[%s198_s8 + $0x38] sm:$0xff] }
  0x14   : > { %343 = vperm.xlu1 %488, %v281_v7   ;;  %338 = vperm.xlu0 %487, %v280_v8   ;;  %v219_v21 = vadd.f32 %v218_v13, %v606_v16  ;;  %v246_v23 = vadd.f32 %v240_v15, %v238_v14  ;;  %v244_v30 = vmul.f32 %v619_v24, %v619_v24 }
  0x15   : > { %v228_v25 = vadd.f32 %v227_v17, %v614_v20  ;;  %v255_v27 = vadd.f32 %v241_v19, %v239_v18  ;;  %v245_v33 = vmul.f32 %v624_v28, %v624_v28 }
  0x16   : > { %v220_v29 = vadd.f32 %v219_v21, %v619_v24  ;;  %v247_v31 = vadd.f32 %v246_v23, %v242_v22 }
  0x17   : > { %v229_v32 = vadd.f32 %v228_v25, %v624_v28  ;;  %v256_v34 = vadd.f32 %v255_v27, %v243_v26 }
  0x18   : > { %v221_v35 = vrot.slane %v220_v29, 4  ;;  %v248_v36 = vadd.f32 %v247_v31, %v244_v30 }
  0x19   : > { %v230_v37 = vrot.slane %v229_v32, 4  ;;  %v257_v38 = vadd.f32 %v256_v34, %v245_v33 }
  0x1a   : > { %v222_v39 = vadd.f32 %v221_v35, %v220_v29  ;;  %v249_v40 = vrot.slane %v248_v36, 4 }
  0x1b   : > { %v231_v41 = vadd.f32 %v230_v37, %v229_v32  ;;  %v258_v42 = vrot.slane %v257_v38, 4 }
  0x1c   : > { %v223_v43 = vrot.slane %v222_v39, 2  ;;  %v250_v44 = vadd.f32 %v249_v40, %v248_v36 }
  0x1d   : > { %v232_v45 = vrot.slane %v231_v41, 2  ;;  %v259_v46 = vadd.f32 %v258_v42, %v257_v38 }
  0x1e   : > { %v224_v47 = vadd.f32 %v223_v43, %v222_v39  ;;  %v251_v48 = vrot.slane %v250_v44, 2 }
  0x1f   : > { %v233_v49 = vadd.f32 %v232_v45, %v231_v41  ;;  %v260_v50 = vrot.slane %v259_v46, 2 }
  0x20   : > { %v225_v51 = vrot.slane %v224_v47, 1  ;;  %v252_v52 = vadd.f32 %v251_v48, %v250_v44 }
  0x21   : > { %v234_v53 = vrot.slane %v233_v49, 1  ;;  %v261_v54 = vadd.f32 %v260_v50, %v259_v46 }
  0x22   : > { %v226_v55 = vadd.f32 %v225_v51, %v224_v47  ;;  %v253_v56 = vrot.slane %v252_v52, 1 }
  0x23   : > { %v235_v57 = vadd.f32 %v234_v53, %v233_v49  ;;  %v262_v58 = vrot.slane %v261_v54, 1 }
  0x24   : > { %v236_v59 = vmul.f32 0.03125, %v226_v55  ;;  %v254_v60 = vadd.f32 %v253_v56, %v252_v52 }
  0x25   : > { %v237_v61 = vmul.f32 0.03125, %v235_v57  ;;  %v263_v62 = vadd.f32 %v262_v58, %v261_v54 }
  0x26   : > { %v264_v63 = vmul.f32 0.03125, %v254_v60  ;;  %v266_v0 = vmul.f32 %v236_v59, %v236_v59  ;;  %v282_v8 = vsub.f32 %v592_v9, %v236_v59  ;;  %v284_v14 = vsub.f32 %v594_v10, %v236_v59 }
  0x27   : > { %v265_v1 = vmul.f32 0.03125, %v263_v62  ;;  %v267_v2 = vmul.f32 %v237_v61, %v237_v61  ;;  %v283_v13 = vsub.f32 %v596_v11, %v237_v61  ;;  %v285_v15 = vsub.f32 %v598_v12, %v237_v61 }
  0x28   : > { %v268_v3 = vsub.f32 %v264_v63, %v266_v0  ;;  %v286_v21 = vsub.f32 %v606_v16, %v236_v59  ;;  %v287_v22 = vsub.f32 %v614_v20, %v237_v61  ;;  %v288_v23 = vsub.f32 %v619_v24, %v236_v59 }
  0x29   : > { %v269_v4 = vsub.f32 %v265_v1, %v267_v2  ;;  %v289_v25 = vsub.f32 %v624_v28, %v237_v61 }
  0x2a   : > { %v270_v5 = vadd.f32 1e-06, %v268_v3 }
  0x2b   : > { %v271_v6 = vadd.f32 1e-06, %v269_v4 }
  0x2c   : > { %489 = vrsqrt.f32 %v270_v5 }
  0x2d   : > { %491 = vrsqrt.f32 %v271_v6 }
  0x36   : > { %v490_v7 = vpop.eup %489 }
  0x37   : > { %v492_v17 = vpop.eup %491  ;;  %v290_v26 = vmul.f32 %v490_v7, %v282_v8  ;;  %v292_v27 = vmul.f32 %v490_v7, %v284_v14  ;;  %v294_v30 = vmul.f32 %v490_v7, %v286_v21  ;;  %v296_v31 = vmul.f32 %v490_v7, %v288_v23 }
  0x38   : > { %v291_v9 = vmul.f32 %v492_v17, %v283_v13  ;;  %v293_v11 = vmul.f32 %v492_v17, %v285_v15  ;;  %v295_v12 = vmul.f32 %v492_v17, %v287_v22  ;;  %v297_v32 = vmul.f32 %v492_v17, %v289_v25 }
  0x87   : > { %v311_v18 = vpop.permute.xlu1 %310  ;;  %v301_v19 = vpop.permute.xlu0 %300 }
  0x88   : > { %v318_v33 = vmul.f32 %v301_v19, %v290_v26  ;;  %v319_v34 = vmul.f32 %v301_v19, %v291_v9  ;;  %v322_v39 = vmul.f32 %v311_v18, %v294_v30  ;;  %v323_v40 = vmul.f32 %v311_v18, %v295_v12 }
  0x8b   : > { %v316_v29 = vpop.permute.xlu1 %315  ;;  %v306_v10 = vpop.permute.xlu0 %305 }
  0x8c   : > { %v320_v16 = vmul.f32 %v306_v10, %v292_v27  ;;  %v321_v35 = vmul.f32 %v306_v10, %v293_v11  ;;  %v324_v41 = vmul.f32 %v316_v29, %v296_v31  ;;  %v325_v42 = vmul.f32 %v316_v29, %v297_v32 }
  0x8f   : > { %v334_v20 = vpop.permute.xlu1 %333  ;;  %v329_v24 = vpop.permute.xlu0 %328 }
  0x90   : > { %v348_v28 = vadd.f32 %v334_v20, %v320_v16  ;;  %v349_v36 = vadd.f32 %v334_v20, %v321_v35  ;;  %v346_v37 = vadd.f32 %v329_v24, %v318_v33  ;;  %v347_v38 = vadd.f32 %v329_v24, %v319_v34 }
  0x92   : > { %356 = vst [vmem:[%s208_s11 + $0x10] sm:$0xff] %v348_v28  ;;  %357 = vst [vmem:[%s208_s11 + $0x18] sm:$0xff] %v349_v36 }
  0x93   : > { %354 = vst [vmem:[%s208_s11] sm:$0xff] %v346_v37  ;;  %355 = vst [vmem:[%s208_s11 + $0x8] sm:$0xff] %v347_v38  ;;  %v344_v43 = vpop.permute.xlu1 %343  ;;  %v339_v44 = vpop.permute.xlu0 %338 }
  0x94   : > { %v352_v45 = vadd.f32 %v344_v43, %v324_v41  ;;  %v353_v46 = vadd.f32 %v344_v43, %v325_v42  ;;  %v350_v47 = vadd.f32 %v339_v44, %v322_v39  ;;  %v351_v48 = vadd.f32 %v339_v44, %v323_v40 }
  0x96   : > { %360 = vst [vmem:[%s208_s11 + $0x30] sm:$0xff] %v352_v45  ;;  %361 = vst [vmem:[%s208_s11 + $0x38] sm:$0xff] %v353_v46 }
  0x97   : > { %358 = vst [vmem:[%s208_s11 + $0x20] sm:$0xff] %v350_v47  ;;  %359 = vst [vmem:[%s208_s11 + $0x28] sm:$0xff] %v351_v48 }
  0x98 PF: > { %s13_s14 = sadd.s32 1, %s515_s14   ;;  %s658_s12 = smov %s511_s13 }
  0x99   : > { %p10_p5 = scmp.ge.s32.totalorder %s13_s14, 4   ;;  %s659_s13 = smov %s661_s15 }
  0x9b   :  { %12 = sbr.rel (!%p10_p5) target bundleno = 2 (0x2), region = 62 }

</bundles_post_ra>
